<compile_context>
chip_gen: v7x
topology: tpu7x:2x2x1
jax: 0.10.0
libtpu: 0.0.40
codegen_flags: <defaults>
</compile_context>

<pallas_src>
import functools
import math

import jax
import jax.numpy as jnp
from jax.experimental import pallas as pl
from jax.experimental.pallas import tpu as pltpu


def _round_up(x, m):
    return (x + m - 1) // m * m


def _combiner_kernel(ast_ref, ast_key_ref, idx_ref, root_key_ref, root_val_ref,
                     wk_ref, bk_ref, wo_ref, bo_ref,
                     out_ref, q_sc, m_sc, l_sc, acc_sc,
                     *, scale, mm_dtype):
    """Fused scatter-attention combiner.

    Grid: (cfg-node tiles [parallel], mapping-entry tiles [arbitrary reduction]).
    Scratch: q_sc [tc, D] per-tile queries, m_sc/l_sc [tc, 1] running max/denominator,
             acc_sc [tc, Dc] unnormalised output accumulator.
    """
    ci = pl.program_id(0)                      # cfg-node tile index (parallel axis)
    mi = pl.program_id(1)                      # mapping-entry tile index (reduction axis)
    tc, d_pad = q_sc.shape
    tm = idx_ref.shape[1]
    n_pad = ast_ref.shape[0]
    p_pad = root_key_ref.shape[0]
    c_base = ci * tc
    f32 = jnp.float32

    def onehot(cond):
        # bool -> f32 -> matmul dtype (exact 0/1 values in either dtype).
        return cond.astype(f32).astype(mm_dtype)

    @pl.when(mi == 0)
    def _init():
        # Build this cfg-tile's attention queries (the scatter_ of the module):
        #   Q[c] = ast_nodes[root_value[p]]  where root_key[p] == c, else 0.
        sel_n = onehot(root_val_ref[...] ==
                       jax.lax.broadcasted_iota(jnp.int32, (p_pad, n_pad), 1))
        q_src = jnp.dot(sel_n, ast_ref[...],
                        preferred_element_type=f32)                        # [P, D]
        sel_c = onehot(root_key_ref[...] ==
                       (jax.lax.broadcasted_iota(jnp.int32, (p_pad, tc), 1) + c_base))
        q = jax.lax.dot_general(sel_c, q_src.astype(mm_dtype),
                                (((0,), (0,)), ((), ())),
                                preferred_element_type=f32)                # [tc, D]
        q_sc[...] = q.astype(mm_dtype)
        m_sc[...] = jnp.full_like(m_sc, -1e30)
        l_sc[...] = jnp.zeros_like(l_sc)
        acc_sc[...] = jnp.zeros_like(acc_sc)

    # Gather this tile's scattered_input rows: x = onehot(ast_key) @ ast_nodes.
    gather = onehot(ast_key_ref[...] ==
                    jax.lax.broadcasted_iota(jnp.int32, (tm, n_pad), 1))    # [tm, N]
    x = jnp.dot(gather, ast_ref[...], preferred_element_type=f32)           # [tm, D]
    x_mm = x.astype(mm_dtype)

    keys = jnp.dot(x_mm, wk_ref[...], preferred_element_type=f32) + bk_ref[...]   # [tm, D]
    vals = jnp.dot(x_mm, wo_ref[...], preferred_element_type=f32) + bo_ref[...]   # [tm, Dc]

    # Scores in [tc, tm] orientation (one matmul contracting D), masked to membership.
    scores = jax.lax.dot_general(q_sc[...], keys.astype(mm_dtype),
                                 (((1,), (1,)), ((), ())),
                                 preferred_element_type=f32) * scale        # [tc, tm]
    member = (jax.lax.broadcasted_iota(jnp.int32, (tc, tm), 0) + c_base) == idx_ref[...]
    scores_m = jnp.where(member, scores, -1e30)

    # Online segment softmax update (flash-attention style, per cfg node).
    m_prev = m_sc[...]
    m_new = jnp.maximum(m_prev, jnp.max(scores_m, axis=1, keepdims=True))    # [tc, 1]
    alpha = jnp.exp(m_prev - m_new)                                          # [tc, 1]
    p = jnp.where(member, jnp.exp(scores_m - m_new), 0.0)                    # [tc, tm]
    l_sc[...] = alpha * l_sc[...] + jnp.sum(p, axis=1, keepdims=True)
    acc_sc[...] = alpha * acc_sc[...] + jnp.dot(
        p.astype(mm_dtype), vals.astype(mm_dtype), preferred_element_type=f32)
    m_sc[...] = m_new

    @pl.when(mi == pl.num_programs(1) - 1)
    def _finalize():
        # Normalise after the segment sum; empty groups have acc == 0 -> zero row.
        l = l_sc[...]
        inv = pl.reciprocal(jnp.where(l > 0.0, l, 1.0), approx=True)         # EUP slot
        out_ref[...] = (acc_sc[...] * inv).astype(out_ref.dtype)


def cfg_sub_ast_expression_combiner(ast_nodes_encodings,
                                    ast_node_to_pdg_key,
                                    ast_node_to_pdg_value,
                                    pdg_to_sub_ast_root_key,
                                    pdg_to_sub_ast_root_value,
                                    nr_cfg_nodes,
                                    params,
                                    *,
                                    mm_dtype=jnp.bfloat16,
                                    tile_m=128,
                                    tile_c=8):
    """Pads to lane/sublane-friendly shapes and launches the fused Pallas kernel."""
    w_k, b_k, w_o, b_o = params
    f32 = jnp.float32
    N, D = ast_nodes_encodings.shape
    Dc = w_o.shape[1]
    M = ast_node_to_pdg_key.shape[0]
    P = pdg_to_sub_ast_root_key.shape[0]
    C = nr_cfg_nodes

    # Lane-dense (x128) last dims, sublane-friendly (x8) second-to-last dims.
    D_pad = _round_up(D, 128)
    Dc_pad = _round_up(Dc, 128)
    N_pad = _round_up(N, 128)
    C_pad = _round_up(C, tile_c)
    M_pad = _round_up(M, tile_m)
    P_pad = _round_up(P, 8)

    # Zero-padded, bf16 (or f32) weights / encodings. Zero pads are exact no-ops
    # for the math; padded mapping entries get index -1 so they join no group.
    ast_p = jnp.pad(ast_nodes_encodings.astype(f32),
                    ((0, N_pad - N), (0, D_pad - D))).astype(mm_dtype)
    wk_p = jnp.pad(w_k.astype(f32), ((0, D_pad - D), (0, D_pad - D))).astype(mm_dtype)
    wo_p = jnp.pad(w_o.astype(f32), ((0, D_pad - D), (0, Dc_pad - Dc))).astype(mm_dtype)
    bk_p = jnp.pad(b_k.astype(f32), ((0, 0), (0, D_pad - D)))
    bo_p = jnp.pad(b_o.astype(f32), ((0, 0), (0, Dc_pad - Dc)))

    ast_key_col = jnp.pad(ast_node_to_pdg_key.astype(jnp.int32),
                          (0, M_pad - M)).reshape(M_pad, 1)
    idx_row = jnp.pad(ast_node_to_pdg_value.astype(jnp.int32),
                      (0, M_pad - M), constant_values=-1).reshape(1, M_pad)
    root_key_col = jnp.pad(pdg_to_sub_ast_root_key.astype(jnp.int32),
                           (0, P_pad - P), constant_values=-1).reshape(P_pad, 1)
    root_val_col = jnp.pad(pdg_to_sub_ast_root_value.astype(jnp.int32),
                           (0, P_pad - P)).reshape(P_pad, 1)

    grid = (C_pad // tile_c, M_pad // tile_m)
    scale = 1.0 / math.sqrt(float(D))
    kernel = functools.partial(_combiner_kernel, scale=scale, mm_dtype=mm_dtype)

    out_p = pl.pallas_call(
        kernel,
        out_shape=jax.ShapeDtypeStruct((C_pad, Dc_pad), f32),
        grid=grid,
        in_specs=[
            pl.BlockSpec((N_pad, D_pad), lambda ci, mi: (0, 0)),     # ast-node table (resident)
            pl.BlockSpec((tile_m, 1), lambda ci, mi: (mi, 0)),       # ast_key column
            pl.BlockSpec((1, tile_m), lambda ci, mi: (0, mi)),       # cfg-node index row
            pl.BlockSpec((P_pad, 1), lambda ci, mi: (0, 0)),         # root_key column
            pl.BlockSpec((P_pad, 1), lambda ci, mi: (0, 0)),         # root_value column
            pl.BlockSpec((D_pad, D_pad), lambda ci, mi: (0, 0)),     # W_k
            pl.BlockSpec((1, D_pad), lambda ci, mi: (0, 0)),         # b_k
            pl.BlockSpec((D_pad, Dc_pad), lambda ci, mi: (0, 0)),    # W_o
            pl.BlockSpec((1, Dc_pad), lambda ci, mi: (0, 0)),        # b_o
        ],
        out_specs=pl.BlockSpec((tile_c, Dc_pad), lambda ci, mi: (ci, 0)),
        scratch_shapes=[
            pltpu.VMEM((tile_c, D_pad), mm_dtype),   # attention queries for this c-tile
            pltpu.VMEM((tile_c, 1), f32),            # running segment max
            pltpu.VMEM((tile_c, 1), f32),            # running segment denominator
            pltpu.VMEM((tile_c, Dc_pad), f32),       # unnormalised output accumulator
        ],
        compiler_params=pltpu.CompilerParams(
            dimension_semantics=("parallel", "arbitrary"),
            vmem_limit_bytes=32 * 1024 * 1024),
    )(ast_p, ast_key_col, idx_row, root_key_col, root_val_col, wk_p, bk_p, wo_p, bo_p)

    return out_p[:C, :Dc]


def _reference(ast_nodes_encodings, ast_key, ast_value, root_key, root_value,
               nr_cfg_nodes, params):
    """Pure-JAX f32 reference of the module semantics (for correctness check)."""
    w_k, b_k, w_o, b_o = params
    D = ast_nodes_encodings.shape[-1]
    attn_queries = jnp.zeros((nr_cfg_nodes, D), jnp.float32).at[root_key].set(
        ast_nodes_encodings[root_value])
    x = ast_nodes_encodings[ast_key]
    keys = x @ w_k + b_k[0]
    scores = jnp.sum(keys * attn_queries[ast_value], axis=-1) / math.sqrt(float(D))
    gmax = jnp.full((nr_cfg_nodes,), -1e30, jnp.float32).at[ast_value].max(scores)
    p = jnp.exp(scores - gmax[ast_value])
    denom = jnp.zeros((nr_cfg_nodes,), jnp.float32).at[ast_value].add(p)
    probs = p / denom[ast_value]
    vals = x @ w_o + b_o[0]
    out = jnp.zeros((nr_cfg_nodes, w_o.shape[-1]), jnp.float32).at[ast_value].add(
        probs[:, None] * vals)
    return out


def _init_linear(key, fan_in, fan_out):
    """Deterministic nn.Linear-style init: U(-1/sqrt(fan_in), 1/sqrt(fan_in))."""
    kw, kb = jax.random.split(key)
    bound = 1.0 / math.sqrt(fan_in)
    w = jax.random.uniform(kw, (fan_in, fan_out), jnp.float32, -bound, bound)
    b = jax.random.uniform(kb, (1, fan_out), jnp.float32, -bound, bound)
    return w, b


if __name__ == "__main__":
    # Small synthetic shapes consistent with the module.
    ast_node_encoding_dim = 32    # D
    combined_dim = 32             # Dc
    nr_ast_nodes = 40             # total encoded AST nodes (N)
    nr_mapping_entries = 24       # M: (ast node -> cfg node) mapping entries
    nr_cfg_nodes = 6              # C
    nr_sub_ast_roots = 6          # P

    key = jax.random.PRNGKey(0)
    k_enc, k_key, k_val, k_root, k_wk, k_wo = jax.random.split(key, 6)

    ast_nodes_encodings = jax.random.normal(
        k_enc, (nr_ast_nodes, ast_node_encoding_dim), jnp.float32)
    ast_node_to_pdg_key = jax.random.randint(
        k_key, (nr_mapping_entries,), 0, nr_ast_nodes, jnp.int32)
    ast_node_to_pdg_value = jax.random.randint(
        k_val, (nr_mapping_entries,), 0, nr_cfg_nodes, jnp.int32)
    pdg_to_sub_ast_root_key = jnp.arange(nr_sub_ast_roots, dtype=jnp.int32)
    pdg_to_sub_ast_root_value = jax.random.randint(
        k_root, (nr_sub_ast_roots,), 0, nr_ast_nodes, jnp.int32)

    w_k, b_k = _init_linear(k_wk, ast_node_encoding_dim, ast_node_encoding_dim)
    w_o, b_o = _init_linear(k_wo, ast_node_encoding_dim, combined_dim)
    params = (w_k, b_k, w_o, b_o)

    ref = _reference(
        ast_nodes_encodings, ast_node_to_pdg_key, ast_node_to_pdg_value,
        pdg_to_sub_ast_root_key, pdg_to_sub_ast_root_value, nr_cfg_nodes, params)

    # 1) f32 matmul path: tight structural check (tolerance covers accumulation-order
    #    differences and the approximate EUP reciprocal).
    out_f32 = cfg_sub_ast_expression_combiner(
        ast_nodes_encodings, ast_node_to_pdg_key, ast_node_to_pdg_value,
        pdg_to_sub_ast_root_key, pdg_to_sub_ast_root_value, nr_cfg_nodes, params,
        mm_dtype=jnp.float32)
    out_f32 = jax.block_until_ready(out_f32)
    assert out_f32.shape == (nr_cfg_nodes, combined_dim)
    assert jnp.allclose(out_f32, ref, atol=1e-2, rtol=1e-2), "f32 kernel mismatch vs reference"

    # 2) bf16 matmul path (default / fast): looser tolerance for bf16 operand rounding.
    out_bf16 = cfg_sub_ast_expression_combiner(
        ast_nodes_encodings, ast_node_to_pdg_key, ast_node_to_pdg_value,
        pdg_to_sub_ast_root_key, pdg_to_sub_ast_root_value, nr_cfg_nodes, params)
    out_bf16 = jax.block_until_ready(out_bf16)
    assert out_bf16.shape == (nr_cfg_nodes, combined_dim)
    assert jnp.allclose(out_bf16, ref, atol=5e-2, rtol=5e-2), "bf16 kernel mismatch vs reference"

    print("KERNEL_OK")
</pallas_src>

<mosaic_0001>
module attributes {stable_mosaic.version = 11 : i64} {
  func.func @_combiner_kernel(%arg0: i32, %arg1: i32, %arg2: memref<128x128xf32, #tpu.memory_space<vmem>>, %arg3: memref<128x1xi32, #tpu.memory_space<vmem>>, %arg4: memref<1x128xi32, #tpu.memory_space<vmem>>, %arg5: memref<8x1xi32, #tpu.memory_space<vmem>>, %arg6: memref<8x1xi32, #tpu.memory_space<vmem>>, %arg7: memref<128x128xf32, #tpu.memory_space<vmem>>, %arg8: memref<1x128xf32, #tpu.memory_space<vmem>>, %arg9: memref<128x128xf32, #tpu.memory_space<vmem>>, %arg10: memref<1x128xf32, #tpu.memory_space<vmem>>, %arg11: memref<8x128xf32, #tpu.memory_space<vmem>>, %arg12: memref<8x128xf32, #tpu.memory_space<vmem>>, %arg13: memref<8x1xf32, #tpu.memory_space<vmem>>, %arg14: memref<8x1xf32, #tpu.memory_space<vmem>>, %arg15: memref<8x128xf32, #tpu.memory_space<vmem>>) attributes {dimension_semantics = [#tpu.dimension_semantics<parallel>, #tpu.dimension_semantics<arbitrary>], iteration_bounds = array<i64: 1, 1>, scalar_prefetch = 0 : i64, scratch_operands = 4 : i64, tpu.core_type = #tpu.core_type<tc>, window_params = [{pipeline_mode = #tpu.pipeline_mode<synchronous>, transform_indices = @transform_0, window_bounds = array<i64: 128, 128>}, {transform_indices = @transform_1, window_bounds = array<i64: 128, 1>}, {transform_indices = @transform_2, window_bounds = array<i64: 1, 128>}, {pipeline_mode = #tpu.pipeline_mode<synchronous>, transform_indices = @transform_3, window_bounds = array<i64: 8, 1>}, {pipeline_mode = #tpu.pipeline_mode<synchronous>, transform_indices = @transform_4, window_bounds = array<i64: 8, 1>}, {pipeline_mode = #tpu.pipeline_mode<synchronous>, transform_indices = @transform_5, window_bounds = array<i64: 128, 128>}, {pipeline_mode = #tpu.pipeline_mode<synchronous>, transform_indices = @transform_6, window_bounds = array<i64: 1, 128>}, {pipeline_mode = #tpu.pipeline_mode<synchronous>, transform_indices = @transform_7, window_bounds = array<i64: 128, 128>}, {pipeline_mode = #tpu.pipeline_mode<synchronous>, transform_indices = @transform_8, window_bounds = array<i64: 1, 128>}, {transform_indices = @transform_9, window_bounds = array<i64: 8, 128>}]} {
    %c8_i32 = arith.constant 8 : i32
    %0 = arith.muli %arg0, %c8_i32 : i32
    %c0_i32 = arith.constant 0 : i32
    %1 = arith.cmpi eq, %arg1, %c0_i32 : i32
    %2 = arith.extui %1 : i1 to i32
    %c0_i32_0 = arith.constant 0 : i32
    %3 = arith.cmpi ne, %2, %c0_i32_0 : i32
    scf.if %3 {
      %c0_39 = arith.constant 0 : index
      %c0_40 = arith.constant 0 : index
      %61 = vector.load %arg6[%c0_39, %c0_40] : memref<8x1xi32, #tpu.memory_space<vmem>>, vector<8x1xi32>
      %62 = tpu.iota {dimensions = array<i32: 1>} : vector<8x128xi32>
      %63 = vector.broadcast %61 : vector<8x1xi32> to vector<8x128xi32>
      %64 = arith.cmpi eq, %63, %62 : vector<8x128xi32>
      %65 = arith.extui %64 : vector<8x128xi1> to vector<8x128xi32>
      %66 = arith.sitofp %65 : vector<8x128xi32> to vector<8x128xf32>
      %c0_41 = arith.constant 0 : index
      %c0_42 = arith.constant 0 : index
      %67 = vector.load %arg2[%c0_41, %c0_42] : memref<128x128xf32, #tpu.memory_space<vmem>>, vector<128x128xf32>
      %cst_43 = arith.constant dense<0.000000e+00> : vector<8x128xf32>
      %68 = tpu.matmul %66, %67, %cst_43 {dimension_numbers = #tpu.dot_dimension_numbers<[1], [0], [0], [1], [0, 0, 1, 1], [], []>} : vector<8x128xf32>, vector<128x128xf32>, vector<8x128xf32> -> vector<8x128xf32>
      %c0_44 = arith.constant 0 : index
      %c0_45 = arith.constant 0 : index
      %69 = vector.load %arg5[%c0_44, %c0_45] : memref<8x1xi32, #tpu.memory_space<vmem>>, vector<8x1xi32>
      %70 = tpu.iota {dimensions = array<i32: 1>} : vector<8x8xi32>
      %71 = vector.broadcast %0 : i32 to vector<8x8xi32>
      %72 = arith.addi %70, %71 : vector<8x8xi32>
      %73 = vector.broadcast %69 : vector<8x1xi32> to vector<8x8xi32>
      %74 = arith.cmpi eq, %73, %72 : vector<8x8xi32>
      %75 = arith.extui %74 : vector<8x8xi1> to vector<8x8xi32>
      %76 = arith.sitofp %75 : vector<8x8xi32> to vector<8x8xf32>
      %cst_46 = arith.constant dense<0.000000e+00> : vector<8x128xf32>
      %77 = tpu.matmul %76, %68, %cst_46 {dimension_numbers = #tpu.dot_dimension_numbers<[0], [0], [1], [1], [0, 1, 1, 1], [], []>} : vector<8x8xf32>, vector<8x128xf32>, vector<8x128xf32> -> vector<8x128xf32>
      %c0_47 = arith.constant 0 : index
      %c0_48 = arith.constant 0 : index
      %78 = vector.load %arg12[%c0_47, %c0_48] : memref<8x128xf32, #tpu.memory_space<vmem>>, vector<8x128xf32>
      tpu.vector_store %arg12[%c0_47, %c0_48], %77 {strides = array<i32>} : memref<8x128xf32, #tpu.memory_space<vmem>>, vector<8x128xf32>,
      %cst_49 = arith.constant -1.000000e+30 : f32
      %79 = vector.broadcast %cst_49 : f32 to vector<8x1xf32>
      %c0_50 = arith.constant 0 : index
      %c0_51 = arith.constant 0 : index
      %80 = vector.load %arg13[%c0_50, %c0_51] : memref<8x1xf32, #tpu.memory_space<vmem>>, vector<8x1xf32>
      tpu.vector_store %arg13[%c0_50, %c0_51], %79 {strides = array<i32>} : memref<8x1xf32, #tpu.memory_space<vmem>>, vector<8x1xf32>,
      %cst_52 = arith.constant 0.000000e+00 : f32
      %81 = vector.broadcast %cst_52 : f32 to vector<8x1xf32>
      %c0_53 = arith.constant 0 : index
      %c0_54 = arith.constant 0 : index
      %82 = vector.load %arg14[%c0_53, %c0_54] : memref<8x1xf32, #tpu.memory_space<vmem>>, vector<8x1xf32>
      tpu.vector_store %arg14[%c0_53, %c0_54], %81 {strides = array<i32>} : memref<8x1xf32, #tpu.memory_space<vmem>>, vector<8x1xf32>,
      %cst_55 = arith.constant 0.000000e+00 : f32
      %83 = vector.broadcast %cst_55 : f32 to vector<8x128xf32>
      %c0_56 = arith.constant 0 : index
      %c0_57 = arith.constant 0 : index
      %84 = vector.load %arg15[%c0_56, %c0_57] : memref<8x128xf32, #tpu.memory_space<vmem>>, vector<8x128xf32>
      tpu.vector_store %arg15[%c0_56, %c0_57], %83 {strides = array<i32>} : memref<8x128xf32, #tpu.memory_space<vmem>>, vector<8x128xf32>,
    } else {
    }
    %c0 = arith.constant 0 : index
    %c0_1 = arith.constant 0 : index
    %4 = vector.load %arg3[%c0, %c0_1] : memref<128x1xi32, #tpu.memory_space<vmem>>, vector<128x1xi32>
    %5 = tpu.iota {dimensions = array<i32: 1>} : vector<128x128xi32>
    %6 = vector.broadcast %4 : vector<128x1xi32> to vector<128x128xi32>
    %7 = arith.cmpi eq, %6, %5 : vector<128x128xi32>
    %8 = arith.extui %7 : vector<128x128xi1> to vector<128x128xi32>
    %9 = arith.sitofp %8 : vector<128x128xi32> to vector<128x128xf32>
    %c0_2 = arith.constant 0 : index
    %c0_3 = arith.constant 0 : index
    %10 = vector.load %arg2[%c0_2, %c0_3] : memref<128x128xf32, #tpu.memory_space<vmem>>, vector<128x128xf32>
    %cst = arith.constant dense<0.000000e+00> : vector<128x128xf32>
    %11 = tpu.matmul %9, %10, %cst {dimension_numbers = #tpu.dot_dimension_numbers<[1], [0], [0], [1], [0, 0, 1, 1], [], []>} : vector<128x128xf32>, vector<128x128xf32>, vector<128x128xf32> -> vector<128x128xf32>
    %c0_4 = arith.constant 0 : index
    %c0_5 = arith.constant 0 : index
    %12 = vector.load %arg7[%c0_4, %c0_5] : memref<128x128xf32, #tpu.memory_space<vmem>>, vector<128x128xf32>
    %cst_6 = arith.constant dense<0.000000e+00> : vector<128x128xf32>
    %13 = tpu.matmul %11, %12, %cst_6 {dimension_numbers = #tpu.dot_dimension_numbers<[1], [0], [0], [1], [0, 0, 1, 1], [], []>} : vector<128x128xf32>, vector<128x128xf32>, vector<128x128xf32> -> vector<128x128xf32>
    %c0_7 = arith.constant 0 : index
    %c0_8 = arith.constant 0 : index
    %14 = vector.load %arg8[%c0_7, %c0_8] : memref<1x128xf32, #tpu.memory_space<vmem>>, vector<1x128xf32>
    %15 = vector.broadcast %14 : vector<1x128xf32> to vector<128x128xf32>
    %16 = arith.addf %13, %15 : vector<128x128xf32>
    %c0_9 = arith.constant 0 : index
    %c0_10 = arith.constant 0 : index
    %17 = vector.load %arg9[%c0_9, %c0_10] : memref<128x128xf32, #tpu.memory_space<vmem>>, vector<128x128xf32>
    %cst_11 = arith.constant dense<0.000000e+00> : vector<128x128xf32>
    %18 = tpu.matmul %11, %17, %cst_11 {dimension_numbers = #tpu.dot_dimension_numbers<[1], [0], [0], [1], [0, 0, 1, 1], [], []>} : vector<128x128xf32>, vector<128x128xf32>, vector<128x128xf32> -> vector<128x128xf32>
    %c0_12 = arith.constant 0 : index
    %c0_13 = arith.constant 0 : index
    %19 = vector.load %arg10[%c0_12, %c0_13] : memref<1x128xf32, #tpu.memory_space<vmem>>, vector<1x128xf32>
    %20 = vector.broadcast %19 : vector<1x128xf32> to vector<128x128xf32>
    %21 = arith.addf %18, %20 : vector<128x128xf32>
    %c0_14 = arith.constant 0 : index
    %c0_15 = arith.constant 0 : index
    %22 = vector.load %arg12[%c0_14, %c0_15] : memref<8x128xf32, #tpu.memory_space<vmem>>, vector<8x128xf32>
    %cst_16 = arith.constant dense<0.000000e+00> : vector<8x128xf32>
    %23 = tpu.matmul %22, %16, %cst_16 {dimension_numbers = #tpu.dot_dimension_numbers<[1], [1], [0], [0], [0, 0, 1, 0], [], []>} : vector<8x128xf32>, vector<128x128xf32>, vector<8x128xf32> -> vector<8x128xf32>
    %cst_17 = arith.constant 0.176776692 : f32
    %24 = vector.broadcast %cst_17 : f32 to vector<8x128xf32>
    %25 = arith.mulf %23, %24 : vector<8x128xf32>
    %26 = tpu.iota {dimensions = array<i32: 0>} : vector<8x128xi32>
    %27 = vector.broadcast %0 : i32 to vector<8x128xi32>
    %28 = arith.addi %26, %27 : vector<8x128xi32>
    %c0_18 = arith.constant 0 : index
    %c0_19 = arith.constant 0 : index
    %29 = vector.load %arg4[%c0_18, %c0_19] : memref<1x128xi32, #tpu.memory_space<vmem>>, vector<1x128xi32>
    %30 = vector.broadcast %29 : vector<1x128xi32> to vector<8x128xi32>
    %31 = arith.cmpi eq, %28, %30 : vector<8x128xi32>
    %cst_20 = arith.constant -1.000000e+30 : f32
    %32 = vector.broadcast %cst_20 : f32 to vector<8x128xf32>
    %33 = arith.select %31, %25, %32 : vector<8x128xi1>, vector<8x128xf32>
    %c0_21 = arith.constant 0 : index
    %c0_22 = arith.constant 0 : index
    %34 = vector.load %arg13[%c0_21, %c0_22] : memref<8x1xf32, #tpu.memory_space<vmem>>, vector<8x1xf32>
    %cst_23 = arith.constant dense<0xFF800000> : vector<8xf32>
    %35 = vector.multi_reduction <maximumf>, %33, %cst_23 [1] : vector<8x128xf32> to vector<8xf32>
    %36 = vector.shape_cast %35 : vector<8xf32> to vector<8x1xf32>
    %37 = arith.maximumf %34, %36 : vector<8x1xf32>
    %38 = arith.subf %34, %37 : vector<8x1xf32>
    %39 = math.exp %38 : vector<8x1xf32>
    %40 = vector.broadcast %37 : vector<8x1xf32> to vector<8x128xf32>
    %41 = arith.subf %33, %40 : vector<8x128xf32>
    %42 = math.exp %41 : vector<8x128xf32>
    %cst_24 = arith.constant 0.000000e+00 : f32
    %43 = vector.broadcast %cst_24 : f32 to vector<8x128xf32>
    %44 = arith.select %31, %42, %43 : vector<8x128xi1>, vector<8x128xf32>
    %c0_25 = arith.constant 0 : index
    %c0_26 = arith.constant 0 : index
    %45 = vector.load %arg14[%c0_25, %c0_26] : memref<8x1xf32, #tpu.memory_space<vmem>>, vector<8x1xf32>
    %46 = arith.mulf %39, %45 : vector<8x1xf32>
    %cst_27 = arith.constant dense<0.000000e+00> : vector<8xf32>
    %47 = vector.multi_reduction <add>, %44, %cst_27 [1] : vector<8x128xf32> to vector<8xf32>
    %48 = vector.shape_cast %47 : vector<8xf32> to vector<8x1xf32>
    %49 = arith.addf %46, %48 : vector<8x1xf32>
    %c0_28 = arith.constant 0 : index
    %c0_29 = arith.constant 0 : index
    %50 = vector.load %arg14[%c0_28, %c0_29] : memref<8x1xf32, #tpu.memory_space<vmem>>, vector<8x1xf32>
    tpu.vector_store %arg14[%c0_28, %c0_29], %49 {strides = array<i32>} : memref<8x1xf32, #tpu.memory_space<vmem>>, vector<8x1xf32>,
    %c0_30 = arith.constant 0 : index
    %c0_31 = arith.constant 0 : index
    %51 = vector.load %arg15[%c0_30, %c0_31] : memref<8x128xf32, #tpu.memory_space<vmem>>, vector<8x128xf32>
    %52 = vector.broadcast %39 : vector<8x1xf32> to vector<8x128xf32>
    %53 = arith.mulf %52, %51 : vector<8x128xf32>
    %cst_32 = arith.constant dense<0.000000e+00> : vector<8x128xf32>
    %54 = tpu.matmul %44, %21, %cst_32 {dimension_numbers = #tpu.dot_dimension_numbers<[1], [0], [0], [1], [0, 0, 1, 1], [], []>} : vector<8x128xf32>, vector<128x128xf32>, vector<8x128xf32> -> vector<8x128xf32>
    %55 = arith.addf %53, %54 : vector<8x128xf32>
    %c0_33 = arith.constant 0 : index
    %c0_34 = arith.constant 0 : index
    %56 = vector.load %arg15[%c0_33, %c0_34] : memref<8x128xf32, #tpu.memory_space<vmem>>, vector<8x128xf32>
    tpu.vector_store %arg15[%c0_33, %c0_34], %55 {strides = array<i32>} : memref<8x128xf32, #tpu.memory_space<vmem>>, vector<8x128xf32>,
    %c0_35 = arith.constant 0 : index
    %c0_36 = arith.constant 0 : index
    %57 = vector.load %arg13[%c0_35, %c0_36] : memref<8x1xf32, #tpu.memory_space<vmem>>, vector<8x1xf32>
    tpu.vector_store %arg13[%c0_35, %c0_36], %37 {strides = array<i32>} : memref<8x1xf32, #tpu.memory_space<vmem>>, vector<8x1xf32>,
    %c0_i32_37 = arith.constant 0 : i32
    %58 = arith.cmpi eq, %arg1, %c0_i32_37 : i32
    %59 = arith.extui %58 : i1 to i32
    %c0_i32_38 = arith.constant 0 : i32
    %60 = arith.cmpi ne, %59, %c0_i32_38 : i32
    scf.if %60 {
      %c0_39 = arith.constant 0 : index
      %c0_40 = arith.constant 0 : index
      %61 = vector.load %arg14[%c0_39, %c0_40] : memref<8x1xf32, #tpu.memory_space<vmem>>, vector<8x1xf32>
      %cst_41 = arith.constant 0.000000e+00 : f32
      %62 = vector.broadcast %cst_41 : f32 to vector<8x1xf32>
      %63 = arith.cmpf ogt, %61, %62 : vector<8x1xf32>
      %cst_42 = arith.constant 1.000000e+00 : f32
      %64 = vector.broadcast %cst_42 : f32 to vector<8x1xf32>
      %65 = arith.select %63, %61, %64 : vector<8x1xi1>, vector<8x1xf32>
      %66 = tpu.reciprocal %65 {approx = true} : vector<8x1xf32> -> vector<8x1xf32>
      %c0_43 = arith.constant 0 : index
      %c0_44 = arith.constant 0 : index
      %67 = vector.load %arg15[%c0_43, %c0_44] : memref<8x128xf32, #tpu.memory_space<vmem>>, vector<8x128xf32>
      %68 = vector.broadcast %66 : vector<8x1xf32> to vector<8x128xf32>
      %69 = arith.mulf %67, %68 : vector<8x128xf32>
      %c0_45 = arith.constant 0 : index
      %c0_46 = arith.constant 0 : index
      %70 = vector.load %arg11[%c0_45, %c0_46] : memref<8x128xf32, #tpu.memory_space<vmem>>, vector<8x128xf32>
      tpu.vector_store %arg11[%c0_45, %c0_46], %69 {strides = array<i32>} : memref<8x128xf32, #tpu.memory_space<vmem>>, vector<8x128xf32>,
    } else {
    }
    return
  }
  func.func @transform_0(%arg0: i32, %arg1: i32) -> (i32, i32) {
    %c0_i32 = arith.constant 0 : i32
    %c0_i32_0 = arith.constant 0 : i32
    %c0_i32_1 = arith.constant 0 : i32
    return %c0_i32, %c0_i32_0 : i32, i32
  }
  func.func @transform_1(%arg0: i32, %arg1: i32) -> (i32, i32) {
    %c0_i32 = arith.constant 0 : i32
    %c0_i32_0 = arith.constant 0 : i32
    return %arg1, %c0_i32 : i32, i32
  }
  func.func @transform_2(%arg0: i32, %arg1: i32) -> (i32, i32) {
    %c0_i32 = arith.constant 0 : i32
    %c0_i32_0 = arith.constant 0 : i32
    return %c0_i32, %arg1 : i32, i32
  }
  func.func @transform_3(%arg0: i32, %arg1: i32) -> (i32, i32) {
    %c0_i32 = arith.constant 0 : i32
    %c0_i32_0 = arith.constant 0 : i32
    %c0_i32_1 = arith.constant 0 : i32
    return %c0_i32, %c0_i32_0 : i32, i32
  }
  func.func @transform_4(%arg0: i32, %arg1: i32) -> (i32, i32) {
    %c0_i32 = arith.constant 0 : i32
    %c0_i32_0 = arith.constant 0 : i32
    %c0_i32_1 = arith.constant 0 : i32
    return %c0_i32, %c0_i32_0 : i32, i32
  }
  func.func @transform_5(%arg0: i32, %arg1: i32) -> (i32, i32) {
    %c0_i32 = arith.constant 0 : i32
    %c0_i32_0 = arith.constant 0 : i32
    %c0_i32_1 = arith.constant 0 : i32
    return %c0_i32, %c0_i32_0 : i32, i32
  }
  func.func @transform_6(%arg0: i32, %arg1: i32) -> (i32, i32) {
    %c0_i32 = arith.constant 0 : i32
    %c0_i32_0 = arith.constant 0 : i32
    %c0_i32_1 = arith.constant 0 : i32
    return %c0_i32, %c0_i32_0 : i32, i32
  }
  func.func @transform_7(%arg0: i32, %arg1: i32) -> (i32, i32) {
    %c0_i32 = arith.constant 0 : i32
    %c0_i32_0 = arith.constant 0 : i32
    %c0_i32_1 = arith.constant 0 : i32
    return %c0_i32, %c0_i32_0 : i32, i32
  }
  func.func @transform_8(%arg0: i32, %arg1: i32) -> (i32, i32) {
    %c0_i32 = arith.constant 0 : i32
    %c0_i32_0 = arith.constant 0 : i32
    %c0_i32_1 = arith.constant 0 : i32
    return %c0_i32, %c0_i32_0 : i32, i32
  }
  func.func @transform_9(%arg0: i32, %arg1: i32) -> (i32, i32) {
    %c0_i32 = arith.constant 0 : i32
    %c0_i32_0 = arith.constant 0 : i32
    return %arg0, %c0_i32 : i32, i32
  }
}

</mosaic_0001>

<bundles_post_ra>
// kernel: tpu_custom_call.1
= control target key start
LH: loop header
LB: loop body
LE: loop exit
PB: predicated region body
PF: predicated region fallthrough
CT: control target
= control target key end

     0   :  { %14 = vsyncpa [#allocation7], 0  ;;  %s2198_s0 = inlined_call_operand.vmem [shape: f32[128,128], index: 0, kind: input, shape index: {}]   ;;  %s2199_s1 = inlined_call_operand.vmem [shape: s32[128,1], index: 1, kind: input, shape index: {}]   ;;  %s2200_s2 = inlined_call_operand.vmem [shape: s32[1,128], index: 2, kind: input, shape index: {}]   ;;  %s2201_s3 = inlined_call_operand.vmem [shape: s32[8,1], index: 3, kind: input, shape index: {}]   ;;  %s2202_s4 = inlined_call_operand.vmem [shape: s32[8,1], index: 4, kind: input, shape index: {}]   ;;  %s2203_s5 = inlined_call_operand.hbm [shape: f32[128,128], index: 5, kind: input, shape index: {}]   ;;  %s2204_s6 = inlined_call_operand.vmem [shape: f32[1,128], index: 6, kind: input, shape index: {}]   ;;  %s2205_s7 = inlined_call_operand.hbm [shape: f32[128,128], index: 7, kind: input, shape index: {}]   ;;  %s2206_s8 = inlined_call_operand.vmem [shape: f32[1,128], index: 8, kind: input, shape index: {}]   ;;  %s2207_s9 = inlined_call_operand.hbm [shape: f32[8,128], index: 9, kind: output, shape index: {}]  }
   0x1   :  { %15 = vsyncpa [#allocation10], 0 }
   0x2   :  { %16 = vsyncpa [#allocation8], 0  ;;  %s1835_s30 = smov [#allocation6]   ;;  %s1763_s13 = scalar_lea.hbm %s2203_s5, 2048 }
   0x3   :  { %s32_s10 = sshll.u32 %s1835_s30, 4  ;;  %p1764_p0 = scmp.ne.s32.totalorder %s2203_s5, %s1763_s13  ;;  %s33_s10 = int_to_ptr.vmem [resolvable:$true] %s32_s10 }
   0x4   :  { %p1767_p1 = scmp.lt.u32.totalorder %s1763_s13, %s2203_s5 }
   0x6   :  { %p1769_p2 = pnand %p1767_p1, %p1764_p0 }
   0x8   :  { %1772 = shalt.err (!%p1769_p2)
}
   0x9   :  { %s1773_s18 = scalar_lea.vmem %s33_s10, 2048  ;;  %p1778_p4 = scmp.lt.s32.totalorder %s33_s10, %s33_s10 }
   0xa   :  { %p1774_p3 = scmp.ne.s32.totalorder %s33_s10, %s1773_s18  ;;  %p1779_p5 = scmp.lt.s32.totalorder %s1773_s18, %s1773_s18 }
   0xc   :  { %p1780_p6 = por %p1779_p5, %p1778_p4 }
   0xe   :  { %p1781_p7 = pnand %p1780_p6, %p1774_p3 }
  0x10   :  { %1784 = shalt.err (!%p1781_p7)
}
  0x11   :  { %s1836_s19 = smov 128   ;;  %s1837_s20 = smov 8  }
  0x12   :  { %38 = dma.hbm_to_vmem [thread:$0]  %s2203_s5, 2048, %s33_s10, [#allocation7], %s1836_s19, %s1836_s19, %s1837_s20  }
  0x13   :  { %s1838_s23 = smov [#allocation9]   ;;  %s1785_s27 = scalar_lea.hbm %s2205_s7, 2048 }
  0x14   :  { %s46_s24 = sshll.u32 %s1838_s23, 4  ;;  %p1786_p8 = scmp.ne.s32.totalorder %s2205_s7, %s1785_s27  ;;  %s47_s24 = int_to_ptr.vmem [resolvable:$true] %s46_s24 }
  0x15   :  { %p1789_p9 = scmp.lt.u32.totalorder %s1785_s27, %s2205_s7 }
  0x17   :  { %p1791_p10 = pnand %p1789_p9, %p1786_p8 }
  0x19   :  { %1794 = shalt.err (!%p1791_p10)
}
  0x1a   :  { %s1795_s12 = scalar_lea.vmem %s47_s24, 2048  ;;  %p1800_p12 = scmp.lt.s32.totalorder %s47_s24, %s47_s24 }
  0x1b   :  { %p1796_p11 = scmp.ne.s32.totalorder %s47_s24, %s1795_s12  ;;  %p1801_p13 = scmp.lt.s32.totalorder %s1795_s12, %s1795_s12 }
  0x1d   :  { %p1802_p0 = por %p1801_p13, %p1800_p12 }
  0x1f   :  { %p1803_p1 = pnand %p1802_p0, %p1796_p11 }
  0x21   :  { %1806 = shalt.err (!%p1803_p1)
}
  0x22   :  { %52 = dma.hbm_to_vmem [thread:$0]  %s2205_s7, 2048, %s47_s24, [#allocation10], %s1836_s19, %s1836_s19, %s1837_s20  }
  0x23   :  { %1829 = dma.done.wait [#allocation7], 2048  }
  0x24   :  { %1830 = vsyncadd [#allocation7], 4294965248 }
  0x25   :  { %1831 = dma.done.wait [#allocation10], 2048  }
  0x26   :  { %1832 = vsyncadd [#allocation10], 4294965248  ;;  %v1839_v0 = vmov 0   ;;  %v1840_v1 = vmov 0.0|0.0   ;;  %v66_v2 = vld [vmem:[%s2202_s4] sm:$0xff]  ;;  %vm1841_vm0 = vmmov 0   ;;  %v67_v44 = vlaneseq }
  0x27   :  { %1755 = vset.pattern.permute.xlu0 %v1839_v0  ;;  %1756 = vset.pattern.permute.xlu1 %v1839_v0  ;;  %v1842_v3 = vmov 0.0   ;;  %v161_v4 = vld [vmem:[%s2201_s3] sm:$0xff]  ;;  %v282_v5 = vld [vmem:[%s2199_s1 + $0x8] sm:$0xff]  ;;  %v77_v9 = vld [vmem:[%s2198_s0 + $0x10] sm:$0xff]  ;;  %v1843_v47 = vmov 1.0   ;;  %vm202_vm3 = vcmask 64512  }
  0x28   :  { %1576 = vmatprep.subr.bf16.mxu0 %v1840_v1  ;;  %70 = vperm.xlu0 %1755, %v66_v2   ;;  %v281_v6 = vld [vmem:[%s2199_s1] sm:$0xff]  ;;  %v76_v8 = vld [vmem:[%s2198_s0 + $0x8] sm:$0xff]  ;;  %v78_v10 = vld [vmem:[%s2198_s0 + $0x18] sm:$0xff]  ;;  %v2054_v45 = vand.u32 127, %v67_v44 }
  0x29   :  { %1330 = vmatprep.mubr.msk.f32.mxu0 %vm1841_vm0, %v1842_v3  ;;  %1333 = vmatprep.subr.mxu1 %v1842_v3  ;;  %v75_v7 = vld [vmem:[%s2198_s0] sm:$0xff]  ;;  %v1953_v12 = vpack.c.bf16 %v78_v10, %v77_v9  ;;  %v283_v13 = vld [vmem:[%s2199_s1 + $0x10] sm:$0xff]  ;;  %v80_v15 = vld [vmem:[%s2198_s0 + $0x28] sm:$0xff] }
  0x2a   :  { %1335 = vmatprep.mubr.msk.f32.mxu1 %vm1841_vm0, %v1842_v3  ;;  %300 = vperm.xlu1 %1756, %v281_v6   ;;  %v1950_v11 = vpack.c.bf16 %v76_v8, %v75_v7  ;;  %v79_v14 = vld [vmem:[%s2198_s0 + $0x20] sm:$0xff]  ;;  %v284_v17 = vld [vmem:[%s2199_s1 + $0x18] sm:$0xff]  ;;  %v81_v18 = vld [vmem:[%s2198_s0 + $0x30] sm:$0xff] }
  0x2b   :  { %v1966_v16 = vpack.c.bf16 %v80_v15, %v79_v14  ;;  %v82_v19 = vld [vmem:[%s2198_s0 + $0x38] sm:$0xff]  ;;  %v285_v21 = vld [vmem:[%s2199_s1 + $0x20] sm:$0xff]  ;;  %v84_v23 = vld [vmem:[%s2198_s0 + $0x48] sm:$0xff] }
  0x2c   :  { %165 = vperm.xlu0 %1755, %v161_v4   ;;  %1578 = vmatpush3.bf16.msra.mxu0 %v1950_v11  ;;  %v1979_v20 = vpack.c.bf16 %v82_v19, %v81_v18  ;;  %v83_v22 = vld [vmem:[%s2198_s0 + $0x40] sm:$0xff]  ;;  %v286_v25 = vld [vmem:[%s2199_s1 + $0x28] sm:$0xff]  ;;  %v85_v26 = vld [vmem:[%s2198_s0 + $0x50] sm:$0xff] }
  0x2d   :  { %1579 = vmatprep.subr.bf16.mxu0 %v1840_v1  ;;  %v1992_v24 = vpack.c.bf16 %v84_v23, %v83_v22  ;;  %v86_v27 = vld [vmem:[%s2198_s0 + $0x58] sm:$0xff]  ;;  %v287_v29 = vld [vmem:[%s2199_s1 + $0x30] sm:$0xff]  ;;  %v87_v30 = vld [vmem:[%s2198_s0 + $0x60] sm:$0xff] }
  0x2e   :  { %v2005_v28 = vpack.c.bf16 %v86_v27, %v85_v26  ;;  %v88_v31 = vld [vmem:[%s2198_s0 + $0x68] sm:$0xff]  ;;  %v288_v33 = vld [vmem:[%s2199_s1 + $0x38] sm:$0xff]  ;;  %v89_v34 = vld [vmem:[%s2198_s0 + $0x70] sm:$0xff] }
  0x2f   :  { %v2018_v32 = vpack.c.bf16 %v88_v31, %v87_v30  ;;  %v90_v35 = vld [vmem:[%s2198_s0 + $0x78] sm:$0xff]  ;;  %v289_v37 = vld [vmem:[%s2199_s1 + $0x40] sm:$0xff]  ;;  %v290_v38 = vld [vmem:[%s2199_s1 + $0x48] sm:$0xff] }
  0x30   :  { %303 = vperm.xlu0 %1755, %v282_v5   ;;  %1581 = vmatpush3.bf16.msra.mxu0 %v1953_v12  ;;  %v1598_v36 = vpack.c.bf16 %v90_v35, %v89_v34  ;;  %v291_v39 = vld [vmem:[%s2199_s1 + $0x50] sm:$0xff]  ;;  %v293_v40 = vld [vmem:[%s2199_s1 + $0x60] sm:$0xff]  ;;  %v294_v41 = vld [vmem:[%s2199_s1 + $0x68] sm:$0xff] }
  0x31   :  { %1582 = vmatprep.subr.bf16.mxu0 %v1840_v1  ;;  %v295_v42 = vld [vmem:[%s2199_s1 + $0x70] sm:$0xff]  ;;  %v296_v43 = vld [vmem:[%s2199_s1 + $0x78] sm:$0xff]  ;;  %v559_v14 = vld [vmem:[#allocation6 + $0x18] sm:$0xff] }
  0x32   :  { %v292_v50 = vld [vmem:[%s2199_s1 + $0x58] sm:$0xff]  ;;  %v556_v8 = vld [vmem:[#allocation6] sm:$0xff]  ;;  %v727_v18 = vld [vmem:[#allocation9 + $0x18] sm:$0xff] }
  0x33   :  { %v557_v9 = vld [vmem:[#allocation6 + $0x8] sm:$0xff]  ;;  %v724_v10 = vld [vmem:[#allocation9] sm:$0xff]  ;;  %v562_v26 = vld [vmem:[#allocation6 + $0x30] sm:$0xff] }
  0x34   :  { %306 = vperm.xlu0 %1755, %v283_v13   ;;  %1584 = vmatpush3.bf16.msra.mxu0 %v1966_v16  ;;  %v558_v13 = vld [vmem:[#allocation6 + $0x10] sm:$0xff]  ;;  %v560_v19 = vld [vmem:[#allocation6 + $0x20] sm:$0xff]  ;;  %v729_v23 = vld [vmem:[#allocation9 + $0x28] sm:$0xff] }
  0x35   :  { %1585 = vmatprep.subr.bf16.mxu0 %v1840_v1  ;;  %v728_v22 = vld [vmem:[#allocation9 + $0x20] sm:$0xff]  ;;  %v563_v27 = vld [vmem:[#allocation6 + $0x38] sm:$0xff]  ;;  %v733_v35 = vld [vmem:[#allocation9 + $0x48] sm:$0xff] }
  0x36   :  { %v1644_v30 = vpack.c.bf16 %v563_v27, %v562_v26  ;;  %v732_v34 = vld [vmem:[#allocation9 + $0x40] sm:$0xff] }
  0x38   :  { %309 = vperm.xlu0 %1755, %v284_v17   ;;  %1587 = vmatpush3.bf16.msra.mxu0 %v1979_v20  ;;  %v726_v17 = vld [vmem:[#allocation9 + $0x10] sm:$0xff] }
  0x39   :  { %1588 = vmatprep.subr.bf16.mxu0 %v1840_v1 }
  0x3c   :  { %312 = vperm.xlu0 %1755, %v285_v21   ;;  %1590 = vmatpush3.bf16.msra.mxu0 %v1992_v24  ;;  %v561_v21 = vld [vmem:[#allocation6 + $0x28] sm:$0xff] }
  0x3d   :  { %1591 = vmatprep.subr.bf16.mxu0 %v1840_v1 }
  0x40   :  { %315 = vperm.xlu0 %1755, %v286_v25   ;;  %1593 = vmatpush3.bf16.msra.mxu0 %v2005_v28  ;;  %v1672_v25 = vpack.c.bf16 %v729_v23, %v728_v22 }
  0x41   :  { %1594 = vmatprep.subr.bf16.mxu0 %v1840_v1 }
  0x44   :  { %318 = vperm.xlu0 %1755, %v287_v29   ;;  %1596 = vmatpush3.bf16.msra.mxu0 %v2018_v32  ;;  %v731_v29 = vld [vmem:[#allocation9 + $0x38] sm:$0xff] }
  0x45   :  { %1597 = vmatprep.subr.bf16.mxu0 %v1840_v1 }
  0x48   :  { %321 = vperm.xlu0 %1755, %v288_v33   ;;  %1599 = vmatpush3.bf16.msra.mxu0 %v1598_v36  ;;  %v565_v33 = vld [vmem:[#allocation6 + $0x48] sm:$0xff] }
  0x4c   :  { %324 = vperm.xlu0 %1755, %v289_v37   ;;  %v1680_v37 = vpack.c.bf16 %v733_v35, %v732_v34 }
  0x50   :  { %327 = vperm.xlu0 %1755, %v290_v38   ;;  %v566_v38 = vld [vmem:[#allocation6 + $0x50] sm:$0xff] }
  0x54   :  { %330 = vperm.xlu0 %1755, %v291_v39   ;;  %v567_v39 = vld [vmem:[#allocation6 + $0x58] sm:$0xff] }
  0x58   :  { %336 = vperm.xlu0 %1755, %v293_v40   ;;  %v734_v40 = vld [vmem:[#allocation9 + $0x50] sm:$0xff] }
  0x5c   :  { %339 = vperm.xlu0 %1755, %v294_v41   ;;  %v735_v41 = vld [vmem:[#allocation9 + $0x58] sm:$0xff] }
  0x60   :  { %342 = vperm.xlu0 %1755, %v295_v42   ;;  %v1652_v42 = vpack.c.bf16 %v567_v39, %v566_v38 }
  0x64   :  { %345 = vperm.xlu0 %1755, %v296_v43   ;;  %v1684_v43 = vpack.c.bf16 %v735_v41, %v734_v40 }
  0xa7   :  { %v71_v46 = vpop.permute.xlu0 %70 }
  0xa8   :  { %vm72_vm1 = vcmp.eq.s32.totalorder %v71_v46, %v2054_v45  ;;  %v569_v46 = vld [vmem:[#allocation6 + $0x68] sm:$0xff] }
  0xa9   :  { %1331 = vmatmul.mubr.msk.f32.vlgmr.msra.gmra.mrb[0].mxu0 %vm72_vm1, %v1843_v47  ;;  %v301_v54 = vpop.permute.xlu1 %300 }
  0xaa   :  { %vm347_vm4 = vcmp.eq.s32.totalorder %v301_v54, %v2054_v45  ;;  %v739_v54 = vld [vmem:[#allocation9 + $0x78] sm:$0xff] }
  0xab   :  { %v166_v48 = vpop.permute.xlu0 %165 }
  0xac   :  { %vm167_vm2 = vcmp.eq.s32.totalorder %v166_v48, %v2054_v45  ;;  %v737_v48 = vld [vmem:[#allocation9 + $0x68] sm:$0xff] }
  0xad   :  { %v1111_v49 = vsel %vm167_vm2, 1.0, %v1842_v3 }
  0xae   :  { %170 = vxpose.xlu1.b32.start.end [1/1] (short) (narrow) %v1111_v49, 8 }
  0xaf   :  { %v304_v51 = vpop.permute.xlu0 %303 }
  0xb0   :  { %vm348_vm5 = vcmp.eq.s32.totalorder %v304_v51, %v2054_v45  ;;  %v570_v51 = vld [vmem:[#allocation6 + $0x70] sm:$0xff] }
  0xb3   :  { %v307_v52 = vpop.permute.xlu0 %306 }
  0xb4   :  { %vm349_vm6 = vcmp.eq.s32.totalorder %v307_v52, %v2054_v45  ;;  %v571_v52 = vld [vmem:[#allocation6 + $0x78] sm:$0xff] }
  0xb7   :  { %v310_v53 = vpop.permute.xlu0 %309 }
  0xb8   :  { %vm350_vm7 = vcmp.eq.s32.totalorder %v310_v53, %v2054_v45  ;;  %v738_v53 = vld [vmem:[#allocation9 + $0x70] sm:$0xff] }
  0xbb   :  { %v313_v55 = vpop.permute.xlu0 %312 }
  0xbc   :  { %vm351_vm8 = vcmp.eq.s32.totalorder %v313_v55, %v2054_v45  ;;  %v1660_v55 = vpack.c.bf16 %v571_v52, %v570_v51 }
  0xbf   :  { %v316_v59 = vpop.permute.xlu0 %315 }
  0xc0   :  { %vm352_vm9 = vcmp.eq.s32.totalorder %v316_v59, %v2054_v45 }
  0xc3   :  { %v319_v60 = vpop.permute.xlu0 %318 }
  0xc4   :  { %vm353_vm10 = vcmp.eq.s32.totalorder %v319_v60, %v2054_v45 }
  0xc7   :  { %v322_v61 = vpop.permute.xlu0 %321 }
  0xc8   :  { %vm354_vm11 = vcmp.eq.s32.totalorder %v322_v61, %v2054_v45 }
  0xcb   :  { %v325_v62 = vpop.permute.xlu0 %324 }
  0xcc   :  { %333 = vperm.xlu1 %1756, %v292_v50   ;;  %vm355_vm12 = vcmp.eq.s32.totalorder %v325_v62, %v2054_v45 }
  0xcf   :  { %v328_v63 = vpop.permute.xlu0 %327 }
  0xd0   :  { %vm356_vm13 = vcmp.eq.s32.totalorder %v328_v63, %v2054_v45 }
  0xd3   :  { %v331_v0 = vpop.permute.xlu0 %330 }
  0xd4   :  { %vm357_vm14 = vcmp.eq.s32.totalorder %v331_v0, %v2054_v45 }
  0xd7   :  { %v337_v2 = vpop.permute.xlu0 %336 }
  0xd8   :  { %vm359_vm1 = vcmp.eq.s32.totalorder %v337_v2, %v2054_v45 }
  0xdb   :  { %v340_v4 = vpop.permute.xlu0 %339 }
  0xdc   :  { %vm360_vm2 = vcmp.eq.s32.totalorder %v340_v4, %v2054_v45 }
  0xdf   :  { %v343_v6 = vpop.permute.xlu0 %342 }
  0xe3   :  { %v346_v7 = vpop.permute.xlu0 %345 }
 0x12e   :  { %v186_v57 = vpop.trf.xlu1 }
 0x14b   :  { %v334_v5 = vpop.permute.xlu1 %333 }
 0x14c   :  { %vm358_vm15 = vcmp.eq.s32.totalorder %v334_v5, %v2054_v45 }
 0x17c   :  { %v157_v56 = vpop.f32.mrb[0].mxu0 }
 0x17d   :  { %v1332_v58 = vpop.f32.mrb[1].mxu0  ;;  %1334 = vmatpush3.msra.mxu1 %v157_v56  ;;  %v1692_v56 = vpack.c.bf16 %v739_v54, %v738_v53 }
 0x17e   :  { %1336 = vmatmul.mubr.msk.f32.vlgmr.msra.gmra.mrb[0].mxu1 %vm202_vm3, %v186_v57  ;;  %1601 = vmatprep.subr.bf16.mxu1 %v1950_v11  ;;  %vm361_vm3 = vcmp.eq.s32.totalorder %v343_v6, %v2054_v45 }
 0x17f   :  { %1603 = vmatpush3.bf16.msra.mxu1 %v1950_v11  ;;  %1370 = vmatprep.mubr.msk.f32.mxu1 %vm347_vm4, %v1843_v47  ;;  %vm362_vm4 = vcmp.eq.s32.totalorder %v346_v7, %v2054_v45  ;;  %v1632_v11 = vpack.c.bf16 %v557_v9, %v556_v8  ;;  %v568_v45 = vld [vmem:[#allocation6 + $0x60] sm:$0xff] }
 0x180   :  { %1605 = vmatprep.subr.bf16.mxu1 %v1953_v12  ;;  %v1656_v49 = vpack.c.bf16 %v569_v46, %v568_v45 }
 0x181   :  { %1633 = vmatprep.subr.bf16.mxu0 %v1632_v11 }
 0x182   :  { %1635 = vmatpush3.bf16.msra.mxu0 %v1632_v11 }
 0x183   :  { %1607 = vmatpush3.bf16.msra.mxu1 %v1953_v12  ;;  %v725_v12 = vld [vmem:[#allocation9 + $0x8] sm:$0xff] }
 0x184   :  { %1609 = vmatprep.subr.bf16.mxu1 %v1966_v16  ;;  %v1664_v15 = vpack.c.bf16 %v725_v12, %v724_v10 }
 0x187   :  { %1611 = vmatpush3.bf16.msra.mxu1 %v1966_v16  ;;  %v1636_v16 = vpack.c.bf16 %v559_v14, %v558_v13  ;;  %v2120_v13 = vld [vmem:[%s2204_s6] ss:$0 sm:$0xff] }
 0x188   :  { %1613 = vmatprep.subr.bf16.mxu1 %v1979_v20  ;;  %v2125_v14 = vld [vmem:[%s2206_s8] ss:$0 sm:$0xff] }
 0x189   :  { %1637 = vmatprep.subr.bf16.mxu0 %v1636_v16 }
 0x18a   :  { %1639 = vmatpush3.bf16.msra.mxu0 %v1636_v16 }
 0x18b   :  { %1615 = vmatpush3.bf16.msra.mxu1 %v1979_v20  ;;  %v1668_v20 = vpack.c.bf16 %v727_v18, %v726_v17 }
 0x18c   :  { %1617 = vmatprep.subr.bf16.mxu1 %v1992_v24 }
 0x18f   :  { %1619 = vmatpush3.bf16.msra.mxu1 %v1992_v24  ;;  %v1640_v24 = vpack.c.bf16 %v561_v21, %v560_v19 }
 0x190   :  { %1621 = vmatprep.subr.bf16.mxu1 %v2005_v28 }
 0x191   :  { %1641 = vmatprep.subr.bf16.mxu0 %v1640_v24 }
 0x192   :  { %1643 = vmatpush3.bf16.msra.mxu0 %v1640_v24 }
 0x193   :  { %1623 = vmatpush3.bf16.msra.mxu1 %v2005_v28  ;;  %v730_v28 = vld [vmem:[#allocation9 + $0x30] sm:$0xff]  ;;  %1645 = vmatprep.subr.bf16.mxu0 %v1644_v30 }
 0x194   :  { %1625 = vmatprep.subr.bf16.mxu1 %v2018_v32  ;;  %v1676_v31 = vpack.c.bf16 %v731_v29, %v730_v28 }
 0x196   :  { %1647 = vmatpush3.bf16.msra.mxu0 %v1644_v30 }
 0x197   :  { %1627 = vmatpush3.bf16.msra.mxu1 %v2018_v32  ;;  %v564_v32 = vld [vmem:[#allocation6 + $0x40] sm:$0xff] }
 0x198   :  { %1629 = vmatprep.subr.bf16.mxu1 %v1598_v36 }
 0x19b   :  { %1631 = vmatpush3.bf16.msra.mxu1 %v1598_v36  ;;  %v1648_v36 = vpack.c.bf16 %v565_v33, %v564_v32 }
 0x19c   :  { %1665 = vmatprep.subr.bf16.mxu1 %v1664_v15 }
 0x19d   :  { %1649 = vmatprep.subr.bf16.mxu0 %v1648_v36 }
 0x19e   :  { %1371 = vmatmul.mubr.msk.f32.vlgmr.msra.gmra.mrb[2].mxu1 %vm348_vm5, %v1843_v47  ;;  %1651 = vmatpush3.bf16.msra.mxu0 %v1648_v36 }
 0x19f   :  { %1373 = vmatprep.mubr.msk.f32.mxu1 %vm349_vm6, %v1843_v47  ;;  %1667 = vmatpush3.bf16.msra.mxu1 %v1664_v15 }
 0x1a0   :  { %1669 = vmatprep.subr.bf16.mxu1 %v1668_v20  ;;  %1653 = vmatprep.subr.bf16.mxu0 %v1652_v42 }
 0x1a2   :  { %1374 = vmatmul.mubr.msk.f32.gmra.mrb[4].mxu1 %vm350_vm7, %v1843_v47  ;;  %1655 = vmatpush3.bf16.msra.mxu0 %v1652_v42 }
 0x1a3   :  { %1376 = vmatprep.mubr.msk.f32.mxu1 %vm351_vm8, %v1843_v47  ;;  %1671 = vmatpush3.bf16.msra.mxu1 %v1668_v20 }
 0x1a4   :  { %1673 = vmatprep.subr.bf16.mxu1 %v1672_v25  ;;  %1657 = vmatprep.subr.bf16.mxu0 %v1656_v49 }
 0x1a6   :  { %1377 = vmatmul.mubr.msk.f32.gmra.mrb[6].mxu1 %vm352_vm9, %v1843_v47  ;;  %1659 = vmatpush3.bf16.msra.mxu0 %v1656_v49 }
 0x1a7   :  { %1379 = vmatprep.mubr.msk.f32.mxu1 %vm353_vm10, %v1843_v47  ;;  %1675 = vmatpush3.bf16.msra.mxu1 %v1672_v25 }
 0x1a8   :  { %1677 = vmatprep.subr.bf16.mxu1 %v1676_v31  ;;  %1661 = vmatprep.subr.bf16.mxu0 %v1660_v55 }
 0x1aa   :  { %1380 = vmatmul.mubr.msk.f32.gmra.mrb[8].mxu1 %vm354_vm11, %v1843_v47  ;;  %1663 = vmatpush3.bf16.msra.mxu0 %v1660_v55 }
 0x1ab   :  { %1382 = vmatprep.mubr.msk.f32.mxu1 %vm355_vm12, %v1843_v47  ;;  %1679 = vmatpush3.bf16.msra.mxu1 %v1676_v31 }
 0x1ac   :  { %1681 = vmatprep.subr.bf16.mxu1 %v1680_v37  ;;  %1696 = vmatprep.subr.bf16.mxu0 %v1840_v1 }
 0x1ae   :  { %1383 = vmatmul.mubr.msk.f32.gmra.mrb[10].mxu1 %vm356_vm13, %v1843_v47 }
 0x1af   :  { %1385 = vmatprep.mubr.msk.f32.mxu1 %vm357_vm14, %v1843_v47  ;;  %1683 = vmatpush3.bf16.msra.mxu1 %v1680_v37 }
 0x1b0   :  { %1685 = vmatprep.subr.bf16.mxu1 %v1684_v43 }
 0x1b2   :  { %1386 = vmatmul.mubr.msk.f32.gmra.mrb[12].mxu1 %vm358_vm15, %v1843_v47 }
 0x1b3   :  { %1388 = vmatprep.mubr.msk.f32.mxu1 %vm359_vm1, %v1843_v47  ;;  %1687 = vmatpush3.bf16.msra.mxu1 %v1684_v43 }
 0x1b6   :  { %1389 = vmatmul.mubr.msk.f32.gmra.mrb[14].mxu1 %vm360_vm2, %v1843_v47 }
 0x1b7   :  { %1391 = vmatprep.mubr.msk.f32.mxu1 %vm361_vm3, %v1843_v47 }
 0x1ba   :  { %1392 = vmatmul.mubr.msk.f32.gmra.mrb[16].mxu1 %vm362_vm4, %v1843_v47  ;;  %v736_v47 = vld [vmem:[#allocation9 + $0x60] sm:$0xff] }
 0x1bb   :  { %v1688_v50 = vpack.c.bf16 %v737_v48, %v736_v47 }
 0x1bd   :  { %1689 = vmatprep.subr.bf16.mxu1 %v1688_v50 }
 0x1be   :  { %1691 = vmatpush3.bf16.msra.mxu1 %v1688_v50 }
 0x1bf   :  { %1693 = vmatprep.subr.bf16.mxu1 %v1692_v56 }
 0x1c2   :  { %1695 = vmatpush3.bf16.msra.mxu1 %v1692_v56 }
 0x1c3   :  { %1720 = vmatprep.subr.bf16.mxu1 %v1840_v1 }
 0x251   :  { %v2111_v57 = vpop.f32.mrb[0].mxu1 }
 0x252   :  { %v1337_v58 = vpop.f32.mrb[1].mxu1 }
 0x271   :  { %v1372_v59 = vpop.f32.mrb[2].mxu1 }
 0x272   :  { %v477_v60 = vpop.f32.mrb[3].mxu1 }
 0x273   :  { %1426 = vmatprep.mubr.f32.mxu0 %v477_v60  ;;  %1482 = vmatprep.mubr.f32.mxu1 %v477_v60 }
 0x274   :  { %1427 = vmatmul.mubr.f32.vlgmr.msra.gmra.mrb[2].mxu0 %v1372_v59  ;;  %1483 = vmatmul.mubr.f32.vlgmr.msra.gmra.mrb[18].mxu1 %v1372_v59 }
 0x275   :  { %v1375_v61 = vpop.f32.mrb[4].mxu1 }
 0x276   :  { %v487_v62 = vpop.f32.mrb[5].mxu1 }
 0x277   :  { %1429 = vmatprep.mubr.f32.mxu0 %v487_v62  ;;  %1485 = vmatprep.mubr.f32.mxu1 %v487_v62 }
 0x278   :  { %1430 = vmatmul.mubr.f32.gmra.mrb[4].mxu0 %v1375_v61  ;;  %1486 = vmatmul.mubr.f32.gmra.mrb[20].mxu1 %v1375_v61 }
 0x279   :  { %v1378_v63 = vpop.f32.mrb[6].mxu1 }
 0x27a   :  { %v497_v0 = vpop.f32.mrb[7].mxu1 }
 0x27b   :  { %1432 = vmatprep.mubr.f32.mxu0 %v497_v0  ;;  %1488 = vmatprep.mubr.f32.mxu1 %v497_v0 }
 0x27c   :  { %1433 = vmatmul.mubr.f32.gmra.mrb[6].mxu0 %v1378_v63  ;;  %1489 = vmatmul.mubr.f32.gmra.mrb[22].mxu1 %v1378_v63 }
 0x27d   :  { %v1381_v2 = vpop.f32.mrb[8].mxu1 }
 0x27e   :  { %v507_v4 = vpop.f32.mrb[9].mxu1 }
 0x27f   :  { %1435 = vmatprep.mubr.f32.mxu0 %v507_v4  ;;  %1491 = vmatprep.mubr.f32.mxu1 %v507_v4 }
 0x280   :  { %1436 = vmatmul.mubr.f32.gmra.mrb[8].mxu0 %v1381_v2  ;;  %1492 = vmatmul.mubr.f32.gmra.mrb[24].mxu1 %v1381_v2 }
 0x281   :  { %v1384_v5 = vpop.f32.mrb[10].mxu1 }
 0x282   :  { %v517_v6 = vpop.f32.mrb[11].mxu1 }
 0x283   :  { %1438 = vmatprep.mubr.f32.mxu0 %v517_v6  ;;  %1494 = vmatprep.mubr.f32.mxu1 %v517_v6 }
 0x284   :  { %1439 = vmatmul.mubr.f32.gmra.mrb[10].mxu0 %v1384_v5  ;;  %1495 = vmatmul.mubr.f32.gmra.mrb[26].mxu1 %v1384_v5 }
 0x285   :  { %v1387_v7 = vpop.f32.mrb[12].mxu1 }
 0x286   :  { %v527_v8 = vpop.f32.mrb[13].mxu1 }
 0x287   :  { %1441 = vmatprep.mubr.f32.mxu0 %v527_v8  ;;  %1497 = vmatprep.mubr.f32.mxu1 %v527_v8 }
 0x288   :  { %1442 = vmatmul.mubr.f32.gmra.mrb[12].mxu0 %v1387_v7  ;;  %1498 = vmatmul.mubr.f32.gmra.mrb[28].mxu1 %v1387_v7 }
 0x289   :  { %v1390_v9 = vpop.f32.mrb[14].mxu1 }
 0x28a   :  { %v537_v10 = vpop.f32.mrb[15].mxu1 }
 0x28b   :  { %1444 = vmatprep.mubr.f32.mxu0 %v537_v10  ;;  %1500 = vmatprep.mubr.f32.mxu1 %v537_v10 }
 0x28c   :  { %1445 = vmatmul.mubr.f32.gmra.mrb[14].mxu0 %v1390_v9  ;;  %1501 = vmatmul.mubr.f32.gmra.mrb[30].mxu1 %v1390_v9 }
 0x28d   :  { %v1393_v11 = vpop.f32.mrb[16].mxu1 }
 0x28e   :  { %v547_v12 = vpop.f32.mrb[17].mxu1 }
 0x28f   :  { %1447 = vmatprep.mubr.f32.mxu0 %v547_v12  ;;  %1503 = vmatprep.mubr.f32.mxu1 %v547_v12 }
 0x290   :  { %1448 = vmatmul.mubr.f32.gmra.mrb[16].mxu0 %v1393_v11  ;;  %1504 = vmatmul.mubr.f32.gmra.mrb[32].mxu1 %v1393_v11 }
 0x291   :  { %1538 = vmatprep.mubr.msk.f32.mxu0 %vm1841_vm0, %v1842_v3  ;;  %1573 = vmatprep.mubr.msk.f32.mxu1 %vm1841_vm0, %v1842_v3  ;;  %vm277_vm0 = vcmask 7168  }
 0x292   :  { %279 = vst.msk [vmem:[#allocation4] sm:$0xff] %vm277_vm0, %v1842_v3 }
 0x347   :  { %v1428_v15 = vpop.f32.mrb[2].mxu0  ;;  %v1484_v16 = vpop.f32.mrb[18].mxu1 }
 0x348   :  { %v651_v17 = vadd.f32 %v1428_v15, %v2120_v13  ;;  %v819_v18 = vadd.f32 %v1484_v16, %v2125_v14  ;;  %v645_v19 = vpop.f32.mrb[3].mxu0  ;;  %v813_v20 = vpop.f32.mrb[19].mxu1 }
 0x349   :  { %v646_v21 = vadd.f32 %v2120_v13, %v645_v19  ;;  %v814_v22 = vadd.f32 %v2125_v14, %v813_v20 }
 0x34b   :  { %v1697_v23 = vpack.c.bf16 %v651_v17, %v646_v21  ;;  %v1721_v24 = vpack.c.bf16 %v819_v18, %v814_v22  ;;  %v1431_v25 = vpop.f32.mrb[4].mxu0  ;;  %v1487_v26 = vpop.f32.mrb[20].mxu1 }
 0x34c   :  { %v661_v27 = vadd.f32 %v1431_v25, %v2120_v13  ;;  %v829_v28 = vadd.f32 %v1487_v26, %v2125_v14  ;;  %v655_v29 = vpop.f32.mrb[5].mxu0  ;;  %v823_v30 = vpop.f32.mrb[21].mxu1 }
 0x34d   :  { %v656_v31 = vadd.f32 %v2120_v13, %v655_v29  ;;  %v824_v32 = vadd.f32 %v2125_v14, %v823_v30  ;;  %1698 = vmatpush3.bf16.xpose.msra.mxu0 %v1697_v23  ;;  %1722 = vmatpush3.bf16.msra.mxu1 %v1721_v24 }
 0x34e   :  { %1723 = vmatprep.subr.bf16.mxu1 %v1840_v1  ;;  %1699 = vmatprep.subr.bf16.mxu0 %v1840_v1 }
 0x34f   :  { %v1700_v33 = vpack.c.bf16 %v661_v27, %v656_v31  ;;  %v1724_v34 = vpack.c.bf16 %v829_v28, %v824_v32  ;;  %v1434_v35 = vpop.f32.mrb[6].mxu0  ;;  %v1490_v36 = vpop.f32.mrb[22].mxu1 }
 0x350   :  { %v671_v37 = vadd.f32 %v1434_v35, %v2120_v13  ;;  %v839_v38 = vadd.f32 %v1490_v36, %v2125_v14  ;;  %v665_v39 = vpop.f32.mrb[7].mxu0  ;;  %v833_v40 = vpop.f32.mrb[23].mxu1 }
 0x351   :  { %v666_v41 = vadd.f32 %v2120_v13, %v665_v39  ;;  %v834_v42 = vadd.f32 %v2125_v14, %v833_v40  ;;  %1725 = vmatpush3.bf16.msra.mxu1 %v1724_v34 }
 0x352   :  { %1726 = vmatprep.subr.bf16.mxu1 %v1840_v1 }
 0x353   :  { %v1703_v43 = vpack.c.bf16 %v671_v37, %v666_v41  ;;  %v1727_v45 = vpack.c.bf16 %v839_v38, %v834_v42  ;;  %v1437_v46 = vpop.f32.mrb[8].mxu0  ;;  %v1493_v47 = vpop.f32.mrb[24].mxu1  ;;  %v1147_v37 = vld [vmem:[%s2200_s2] ss:$0 sm:$0xff]  ;;  %s1845_s2 = smov [#allocation11]  }
 0x354   :  { %v681_v48 = vadd.f32 %v1437_v46, %v2120_v13  ;;  %v849_v49 = vadd.f32 %v1493_v47, %v2125_v14  ;;  %v675_v50 = vpop.f32.mrb[9].mxu0  ;;  %v843_v51 = vpop.f32.mrb[25].mxu1  ;;  %s1099_s30 = sshll.u32 %s1845_s2, 4  ;;  %s1100_s30 = int_to_ptr.vmem [resolvable:$true] %s1099_s30 }
 0x355   :  { %v676_v52 = vadd.f32 %v2120_v13, %v675_v50  ;;  %v844_v53 = vadd.f32 %v2125_v14, %v843_v51  ;;  %1701 = vmatpush3.bf16.xpose.msra.mxu0 %v1700_v33  ;;  %1728 = vmatpush3.bf16.msra.mxu1 %v1727_v45  ;;  %v991_v50 = vld [vmem:[#allocation4] sm:$0xff]  ;;  %s1807_s11 = scalar_lea.vmem %s1100_s30, 128  ;;  %p1812_p3 = scmp.lt.s32.totalorder %s1100_s30, %s1100_s30 }
 0x356   :  { %1729 = vmatprep.subr.bf16.mxu1 %v1840_v1  ;;  %1702 = vmatprep.subr.bf16.mxu0 %v1840_v1  ;;  %p1808_p2 = scmp.ne.s32.totalorder %s1100_s30, %s1807_s11  ;;  %p1813_p4 = scmp.lt.s32.totalorder %s1807_s11, %s1807_s11 }
 0x357   :  { %v1706_v54 = vpack.c.bf16 %v681_v48, %v676_v52  ;;  %v1730_v55 = vpack.c.bf16 %v849_v49, %v844_v53  ;;  %v1440_v56 = vpop.f32.mrb[10].mxu0  ;;  %v1496_v58 = vpop.f32.mrb[26].mxu1 }
 0x358   :  { %v691_v59 = vadd.f32 %v1440_v56, %v2120_v13  ;;  %v859_v60 = vadd.f32 %v1496_v58, %v2125_v14  ;;  %v685_v61 = vpop.f32.mrb[11].mxu0  ;;  %v853_v62 = vpop.f32.mrb[27].mxu1  ;;  %p1814_p5 = por %p1813_p4, %p1812_p3 }
 0x359   :  { %v686_v63 = vadd.f32 %v2120_v13, %v685_v61  ;;  %v854_v0 = vadd.f32 %v2125_v14, %v853_v62  ;;  %1731 = vmatpush3.bf16.msra.mxu1 %v1730_v55 }
 0x35a   :  { %1732 = vmatprep.subr.bf16.mxu1 %v1840_v1  ;;  %p1815_p6 = pnand %p1814_p5, %p1808_p2 }
 0x35b   :  { %v1709_v2 = vpack.c.bf16 %v691_v59, %v686_v63  ;;  %v1733_v4 = vpack.c.bf16 %v859_v60, %v854_v0  ;;  %v1443_v5 = vpop.f32.mrb[12].mxu0  ;;  %v1499_v6 = vpop.f32.mrb[28].mxu1 }
 0x35c   :  { %v701_v7 = vadd.f32 %v1443_v5, %v2120_v13  ;;  %v869_v8 = vadd.f32 %v1499_v6, %v2125_v14  ;;  %v695_v9 = vpop.f32.mrb[13].mxu0  ;;  %v863_v10 = vpop.f32.mrb[29].mxu1 }
 0x35d   :  { %v696_v11 = vadd.f32 %v2120_v13, %v695_v9  ;;  %v864_v12 = vadd.f32 %v2125_v14, %v863_v10  ;;  %1704 = vmatpush3.bf16.xpose.msra.mxu0 %v1703_v43  ;;  %1734 = vmatpush3.bf16.msra.mxu1 %v1733_v4 }
 0x35e   :  { %1735 = vmatprep.subr.bf16.mxu1 %v1840_v1  ;;  %1705 = vmatprep.subr.bf16.mxu0 %v1840_v1 }
 0x35f   :  { %v1712_v15 = vpack.c.bf16 %v701_v7, %v696_v11  ;;  %v1736_v16 = vpack.c.bf16 %v869_v8, %v864_v12  ;;  %v1446_v17 = vpop.f32.mrb[14].mxu0  ;;  %v1502_v18 = vpop.f32.mrb[30].mxu1 }
 0x360   :  { %v711_v19 = vadd.f32 %v1446_v17, %v2120_v13  ;;  %v879_v20 = vadd.f32 %v1502_v18, %v2125_v14  ;;  %v705_v21 = vpop.f32.mrb[15].mxu0  ;;  %v873_v22 = vpop.f32.mrb[31].mxu1 }
 0x361   :  { %v706_v23 = vadd.f32 %v2120_v13, %v705_v21  ;;  %v874_v24 = vadd.f32 %v2125_v14, %v873_v22  ;;  %1737 = vmatpush3.bf16.msra.mxu1 %v1736_v16 }
 0x362   :  { %1738 = vmatprep.subr.bf16.mxu1 %v1840_v1 }
 0x363   :  { %v1715_v25 = vpack.c.bf16 %v711_v19, %v706_v23  ;;  %v1739_v26 = vpack.c.bf16 %v879_v20, %v874_v24  ;;  %v1449_v27 = vpop.f32.mrb[16].mxu0  ;;  %v1505_v28 = vpop.f32.mrb[32].mxu1 }
 0x364   :  { %v721_v29 = vadd.f32 %v1449_v27, %v2120_v13  ;;  %v889_v30 = vadd.f32 %v1505_v28, %v2125_v14  ;;  %v715_v31 = vpop.f32.mrb[17].mxu0  ;;  %v883_v32 = vpop.f32.mrb[33].mxu1 }
 0x365   :  { %v716_v33 = vadd.f32 %v2120_v13, %v715_v31  ;;  %v884_v34 = vadd.f32 %v2125_v14, %v883_v32  ;;  %1707 = vmatpush3.bf16.xpose.msra.mxu0 %v1706_v54  ;;  %1740 = vmatpush3.bf16.msra.mxu1 %v1739_v26  ;;  %v1844_v13 = vmov -1e+30   ;;  %v965_v14 = vshrl.u32 %v67_v44, 7 }
 0x366   :  { %1741 = vmatprep.subr.bf16.mxu1 %v1840_v1  ;;  %1708 = vmatprep.subr.bf16.mxu0 %v1840_v1  ;;  %278 = vst.msk [vmem:[#allocation3] sm:$0xff] %vm277_vm0, %v1844_v13 }
 0x367   :  { %v1718_v35 = vpack.c.bf16 %v721_v29, %v716_v33  ;;  %v1742_v36 = vpack.c.bf16 %v889_v30, %v884_v34  ;;  %vm973_vm5 = vcmp.eq.s32.totalorder %v965_v14, %v1147_v37 }
 0x369   :  { %1743 = vmatpush3.bf16.msra.mxu1 %v1742_v36 }
 0x36d   :  { %1710 = vmatpush3.bf16.xpose.msra.mxu0 %v1709_v2 }
 0x36e   :  { %1711 = vmatprep.subr.bf16.mxu0 %v1840_v1 }
 0x375   :  { %1713 = vmatpush3.bf16.xpose.msra.mxu0 %v1712_v15 }
 0x376   :  { %1714 = vmatprep.subr.bf16.mxu0 %v1840_v1 }
 0x37d   :  { %1716 = vmatpush3.bf16.xpose.msra.mxu0 %v1715_v25 }
 0x37e   :  { %1717 = vmatprep.subr.bf16.mxu0 %v1840_v1 }
 0x385   :  { %1719 = vmatpush3.bf16.xpose.msra.mxu0 %v1718_v35 }
 0x38c   :  { %1539 = vmatmul.mubr.f32.vlgmr.msra.gmra.mrb[18].mxu0 %v2111_v57  ;;  %v975_v57 = vld [vmem:[#allocation3] sm:$0xff] }
 0x45f   :  { %v959_v38 = vpop.f32.mrb[18].mxu0 }
 0x460   :  { %v963_v39 = vmul.f32 0.17677669, %v959_v38  ;;  %v1540_v1 = vpop.f32.mrb[19].mxu0 }
 0x462   :  { %v974_v40 = vsel %vm973_vm5, %v963_v39, -1e+30 }
 0x463   :  { %976 = vmax.xlane.f32.xlu0 %v974_v40 }
 0x4f0   :  { %v977_v41 = vpop.xlane.xlu0 %976 }
 0x4f1   :  { %v978_v42 = vmax.f32 %v975_v57, %v977_v41 }
 0x4f3   :  { %v979_v43 = vsub.f32 %v975_v57, %v978_v42  ;;  %1077 = vst.msk [vmem:[#allocation3] sm:$0xff] %vm277_vm0, %v978_v42  ;;  %984 = vperm.xlu1 %1756, %v978_v42  }
 0x4f5   :  { %v980_v3 = vmul.f32 1.442695, %v979_v43 }
 0x4f7   :  { %1757 = vpow2.f32 %v980_v3 }
 0x501   :  { %v1758_v44 = vpop.eup %1757 }
 0x502   :  { %1001 = vperm.xlu0 %1755, %v1758_v44   ;;  %v992_v51 = vmul.f32 %v1758_v44, %v991_v50 }
 0x572   :  { %v985_v45 = vpop.permute.xlu1 %984 }
 0x573   :  { %v987_v46 = vsub.f32 %v974_v40, %v985_v45 }
 0x575   :  { %v988_v47 = vmul.f32 1.442695, %v987_v46 }
 0x577   :  { %1759 = vpow2.f32 %v988_v47 }
 0x581   :  { %v1760_v48 = vpop.eup %1759  ;;  %v1002_v60 = vpop.permute.xlu0 %1001 }
 0x582   :  { %1574 = vmatmul.mubr.msk.f32.vlgmr.msra.gmra.mrb[34].mxu1 %vm973_vm5, %v1760_v48  ;;  %v990_v49 = vsel %vm973_vm5, %v1760_v48, 0.0  ;;  %v1004_v61 = vmul.f32 0.0, %v1002_v60 }
 0x583   :  { %993 = vadd.xlane.f32.xlu1 %v990_v49 }
 0x610   :  { %v994_v52 = vpop.xlane.xlu1 %993 }
 0x611   :  { %v995_v53 = vadd.f32 %v994_v52, %v992_v51 }
 0x613   :  { %997 = vst.msk [vmem:[#allocation4] sm:$0xff] %vm277_vm0, %v995_v53 }
 0x61a   :  { %v1081_v54 = vld [vmem:[#allocation4] sm:$0xff] }
 0x61b   :  { %vm1082_vm6 = vcmp.gt.f32.partialorder %v1081_v54, 0.0 }
 0x61c   :  { %v1083_v55 = vsel %vm1082_vm6, %v1081_v54, 1.0 }
 0x61d   :  { %1761 = vrcp.f32 %v1083_v55 }
 0x627   :  { %v1762_v56 = vpop.eup %1761 }
 0x628   :  { %1088 = vperm.xlu1 %1756, %v1762_v56  }
 0x655   :  { %v1071_v58 = vpop.f32.mrb[34].mxu1 }
 0x656   :  { %v1575_v59 = vpop.f32.mrb[35].mxu1  ;;  %v1075_v62 = vadd.f32 %v1071_v58, %v1004_v61 }
 0x6a7   :  { %v1089_v63 = vpop.permute.xlu1 %1088 }
 0x6a8   :  { %v1091_v0 = vmul.f32 %v1089_v63, %v1075_v62 }
 0x6aa   :  { %1092 = vst [vmem:[#allocation11] sm:$0xff] %v1091_v0 }
 0x6ab   :  { %1818 = shalt.err (!%p1815_p6)
}
 0x6ac   :  { %s1819_s10 = scalar_lea.hbm %s2207_s9, 128 }
 0x6ad   :  { %p1820_p7 = scmp.ne.s32.totalorder %s2207_s9, %s1819_s10  ;;  %p1823_p8 = scmp.lt.u32.totalorder %s1819_s10, %s2207_s9 }
 0x6af   :  { %p1825_p9 = pnand %p1823_p8, %p1820_p7 }
 0x6b1   :  { %1828 = shalt.err (!%p1825_p9)
}
 0x6b2   :  { %1102 = dma.vmem_to_hbm [thread:$0]  %s1100_s30, 128, %s2207_s9, [#allocation8]  }
 0x6b3   :  { %1833 = dma.done.wait [#allocation8], 128  }
 0x6b4   :  { %1834 = vsyncadd [#allocation8], 4294967168 }
 0x6b5   :  { %1106 = vsyncpa [#allocation7], 1 }
 0x6b6   :  { %1107 = vsyncpa [#allocation10], 1 }
 0x6b7   :  { %1108 = vsyncpa [#allocation8], 1 }

</bundles_post_ra>
